<compile_context>
chip_gen: v6e
topology: v6e:2x2x1
jax: 0.10.0
libtpu: 0.0.40
codegen_flags: <defaults>
</compile_context>

<pallas_src>
import jax
import jax.numpy as jnp
import numpy as np
from jax import lax
from jax.experimental import pallas as pl
from jax.experimental.pallas import tpu as pltpu


def _round_up(x, m):
    return ((x + m - 1) // m) * m


# ---------------------------------------------------------------------------
# dtype handling: view the feature axis as 32-bit words (bit-exact, dtype
# uniform for the in-kernel gather; bf16/int8 rows are copied exactly).
# ---------------------------------------------------------------------------
def _pack_to_words(h):
    itemsize = jnp.dtype(h.dtype).itemsize
    if itemsize > 4:
        # TODO(synk): 8-byte dtypes (f64/i64, rare on TPU) are not supported.
        raise NotImplementedError("unpool: dtypes wider than 4 bytes unsupported")
    F = h.shape[-1]
    pack = 4 // itemsize
    pad_cols = (-F) % pack
    if pad_cols:
        h = jnp.pad(h, [(0, 0)] * (h.ndim - 1) + [(0, pad_cols)])
    if pack == 1:
        h_w = lax.bitcast_convert_type(h, jnp.uint32)
    else:
        Fp = F + pad_cols
        h_w = lax.bitcast_convert_type(
            h.reshape(*h.shape[:-1], Fp // pack, pack), jnp.uint32)
    return h_w, pack


def _unpack_from_words(out_w, dtype, F, pack):
    out = lax.bitcast_convert_type(out_w, dtype)
    if pack > 1:
        out = out.reshape(*out.shape[:-2], out.shape[-2] * pack)
    return out[..., :F]


# ---------------------------------------------------------------------------
# Kernels (operate on the squeezed 2-D view; 3-D uses a squeezed batch dim).
# ---------------------------------------------------------------------------
def _gather_kernel(inv_ref, h_ref, out_ref):
    # inv_ref: (tile_p, 1) int32, -1 = "leave this output row zero"
    # h_ref:   (N, tile_f) uint32   out_ref: (tile_p, tile_f) uint32
    iv = inv_ref[...]
    src = jnp.maximum(iv, 0)                       # clamp the -1 sentinel
    tile_p, tile_f = out_ref.shape
    idx = jnp.broadcast_to(src, (tile_p, tile_f))
    gathered = jnp.take_along_axis(h_ref[...], idx, axis=0,
                                   mode="promise_in_bounds")
    out_ref[...] = jnp.where(iv >= 0, gathered, jnp.zeros_like(gathered))


def _make_loop_kernel(tile_p, row_axis, unroll):
    # Fallback: row-copy loop driven by SMEM-prefetched inv.  One store per
    # output row (zeros via select, not a second pass), no branch, unrolled.
    def kernel(inv_ref, h_ref, out_ref):
        base = pl.program_id(row_axis) * tile_p
        zero_row = jnp.zeros((1, out_ref.shape[-1]), out_ref.dtype)

        def body(r, carry):
            iv = inv_ref[base + r]
            src = jnp.maximum(iv, 0)
            row = h_ref[pl.ds(src, 1), :]
            out_ref[pl.ds(r, 1), :] = jnp.where(iv >= 0, row, zero_row)
            return carry

        lax.fori_loop(0, tile_p, body, 0, unroll=unroll)

    return kernel


# ---------------------------------------------------------------------------
# Tiling / VMEM budgeting
# ---------------------------------------------------------------------------
def _choose_tiling(P, N, F_w):
    word = 4
    target_out = 512 * 1024          # ~0.5 MiB output blocks amortize grid overhead
    tile_p = min(max(P, 1), max(8, target_out // max(1, F_w * word)))
    tile_p = min(_round_up(tile_p, 8), 2048)
    # keep >= 2 row blocks when possible so both v7x TensorCores get work
    if _round_up(max(P, 1), tile_p) // tile_p < 2 and tile_p > 8:
        tile_p = max(8, _round_up((P + 1) // 2, 8))
    P_pad = _round_up(max(P, 1), tile_p)
    n_p = P_pad // tile_p

    # Bound the VMEM-resident h block (v7x only has 64 MiB of VMEM).
    h_block_budget = 12 * 2**20
    if N * F_w * word > h_block_budget and F_w > 128:
        tile_f = max(128, ((h_block_budget // (N * word)) // 128) * 128)
        F_pad = _round_up(F_w, tile_f)
    else:
        # TODO(synk): huge N with small F (h block > budget, F <= 128) would
        # need an HBM-resident manual-DMA gather path; not implemented here.
        tile_f = F_w
        F_pad = F_w
    n_f = F_pad // tile_f
    return tile_p, P_pad, n_p, tile_f, F_pad, n_f


def _vmem_limit(h_block_bytes, out_block_bytes, inv_block_bytes, h_bufs):
    need = ((h_bufs + 1) * h_block_bytes + 4 * out_block_bytes
            + 2 * inv_block_bytes + (4 << 20))
    try:
        cap = int(pltpu.get_tpu_info().vmem_capacity_bytes)
    except Exception:
        cap = 64 << 20
    return int(min(max(need, 8 << 20), max(cap - (8 << 20), 32 << 20)))


# ---------------------------------------------------------------------------
# Core (word-typed) implementation
# ---------------------------------------------------------------------------
def _unpool_words(h_w, P, idx, impl):
    if h_w.ndim == 2:
        batch = None
        N, F_w = h_w.shape
    else:
        batch, N, F_w = h_w.shape

    tile_p, P_pad, n_p, tile_f, F_pad, n_f = _choose_tiling(P, N, F_w)

    if F_pad != F_w:
        h_w = jnp.pad(h_w, [(0, 0)] * (h_w.ndim - 1) + [(0, F_pad - F_w)])

    # inv[p] = source row of h landing at output row p, -1 if it stays zero.
    inv = jnp.full((P_pad,), -1, jnp.int32)
    inv = inv.at[idx].set(jnp.arange(N, dtype=jnp.int32))

    word = 4
    h_block_bytes = N * tile_f * word
    out_block_bytes = tile_p * tile_f * word
    inv_block_bytes = tile_p * word
    h_bufs = 1 if impl == "gather_sb" else 2
    vmem_limit = _vmem_limit(h_block_bytes, out_block_bytes,
                             inv_block_bytes, h_bufs)

    nb = 1 if batch is None else batch
    cost = pl.CostEstimate(
        flops=0, transcendentals=0,
        bytes_accessed=int(nb * (N * F_pad + P_pad * F_pad) * word
                           + P_pad * word))

    if impl in ("gather_sb", "gather"):
        h_kwargs = ({"pipeline_mode": pl.Buffered(1)}
                    if impl == "gather_sb" else {})
        if batch is None:
            grid = (n_f, n_p)
            sem = ("parallel", "parallel")
            in_specs = [
                pl.BlockSpec((tile_p, 1), lambda f, j: (j, 0)),
                pl.BlockSpec((N, tile_f), lambda f, j: (0, f), **h_kwargs),
            ]
            out_spec = pl.BlockSpec((tile_p, tile_f), lambda f, j: (j, f))
            out_shape = jax.ShapeDtypeStruct((P_pad, F_pad), jnp.uint32)
        else:
            grid = (batch, n_f, n_p)
            sem = ("parallel", "parallel", "parallel")
            in_specs = [
                pl.BlockSpec((tile_p, 1), lambda b, f, j: (j, 0)),
                pl.BlockSpec((None, N, tile_f),
                             lambda b, f, j: (b, 0, f), **h_kwargs),
            ]
            out_spec = pl.BlockSpec((None, tile_p, tile_f),
                                    lambda b, f, j: (b, j, f))
            out_shape = jax.ShapeDtypeStruct((batch, P_pad, F_pad), jnp.uint32)

        out = pl.pallas_call(
            _gather_kernel,
            out_shape=out_shape,
            grid=grid,
            in_specs=in_specs,
            out_specs=out_spec,
            compiler_params=pltpu.CompilerParams(
                dimension_semantics=sem, vmem_limit_bytes=vmem_limit),
            cost_estimate=cost,
        )(inv.reshape(P_pad, 1), h_w)
    else:
        # Fallback loop path: inv scalar-prefetched into SMEM.
        # TODO(synk): for extremely large P the 1-D SMEM prefetch array could
        # exceed SMEM; the (preferred) gather path above does not use SMEM.
        if batch is None:
            grid = (n_f, n_p)
            sem = ("parallel", "parallel")
            row_axis = 1
            in_specs = [pl.BlockSpec((N, tile_f), lambda f, j, inv_r: (0, f))]
            out_spec = pl.BlockSpec((tile_p, tile_f), lambda f, j, inv_r: (j, f))
            out_shape = jax.ShapeDtypeStruct((P_pad, F_pad), jnp.uint32)
        else:
            grid = (batch, n_f, n_p)
            sem = ("parallel", "parallel", "parallel")
            row_axis = 2
            in_specs = [pl.BlockSpec((None, N, tile_f),
                                     lambda b, f, j, inv_r: (b, 0, f))]
            out_spec = pl.BlockSpec((None, tile_p, tile_f),
                                    lambda b, f, j, inv_r: (b, j, f))
            out_shape = jax.ShapeDtypeStruct((batch, P_pad, F_pad), jnp.uint32)

        kernel = _make_loop_kernel(tile_p, row_axis, unroll=8)
        grid_spec = pltpu.PrefetchScalarGridSpec(
            num_scalar_prefetch=1, grid=grid,
            in_specs=in_specs, out_specs=out_spec)
        out = pl.pallas_call(
            kernel,
            out_shape=out_shape,
            grid_spec=grid_spec,
            compiler_params=pltpu.CompilerParams(
                dimension_semantics=sem, vmem_limit_bytes=vmem_limit),
            cost_estimate=cost,
        )(inv, h_w)

    if batch is None:
        return out[:P, :F_w]
    return out[:, :P, :F_w]


# ---------------------------------------------------------------------------
# One-time capability probe: prefer the vectorized gather (single-buffered h),
# verify compilation *and* numerics on a small case, otherwise fall back.
# ---------------------------------------------------------------------------
_IMPL = None


def _resolve_impl():
    global _IMPL
    if _IMPL is not None:
        return _IMPL
    N, P, F = 24, 50, 96
    idx = jax.random.permutation(jax.random.PRNGKey(123), P)[:N].astype(jnp.int32)
    h = jnp.arange(N * F, dtype=jnp.float32).reshape(N, F)
    ref = jnp.zeros((P, F), jnp.float32).at[idx].set(h)
    for impl in ("gather_sb", "gather", "loop"):
        try:
            h_w, pack = _pack_to_words(h)
            out_w = _unpool_words(h_w, P, idx, impl)
            out = _unpack_from_words(out_w, jnp.float32, F, pack)
            if bool(jnp.all(out == ref)):
                _IMPL = impl
                return _IMPL
        except Exception:
            continue
    _IMPL = "loop"
    return _IMPL


# ---------------------------------------------------------------------------
# Public wrapper (matches Unpool.forward)
# ---------------------------------------------------------------------------
def unpool(h, pre_node_num, idx):
    """Pallas equivalent of Unpool.forward(h, pre_node_num, idx)."""
    h = jnp.asarray(h)
    idx = jnp.asarray(idx, jnp.int32).reshape(-1)
    P = int(pre_node_num)

    if h.ndim not in (2, 3):
        raise ValueError("h must be 2D or 3D")
    N, F = h.shape[-2], h.shape[-1]
    batch_shape = h.shape[:-2]

    if N == 0 or P == 0 or F == 0:
        return jnp.zeros(batch_shape + (P, F), h.dtype)

    h_w, pack = _pack_to_words(h)
    impl = _resolve_impl()
    out_w = _unpool_words(h_w, P, idx, impl)
    return _unpack_from_words(out_w, h.dtype, F, pack)


if __name__ == "__main__":
    key = jax.random.PRNGKey(0)
    k1, k2, k3, k4 = jax.random.split(key, 4)

    B, N, P, F = 2, 8, 16, 32
    idx = jax.random.permutation(k1, P)[:N].astype(jnp.int32)

    # ---- 2D case: h is [N, F]
    h2 = jax.random.normal(k2, (N, F), dtype=jnp.float32)
    out2 = jax.block_until_ready(unpool(h2, P, idx))
    ref2 = jnp.zeros((P, F), h2.dtype).at[idx].set(h2)
    assert out2.shape == (P, F) and out2.dtype == h2.dtype
    np.testing.assert_allclose(np.asarray(out2), np.asarray(ref2), atol=0.0)

    # ---- 3D case: h is [B, N, F]
    h3 = jax.random.normal(k3, (B, N, F), dtype=jnp.float32)
    out3 = jax.block_until_ready(unpool(h3, P, idx))
    ref3 = jnp.zeros((B, P, F), h3.dtype).at[:, idx].set(h3)
    assert out3.shape == (B, P, F) and out3.dtype == h3.dtype
    np.testing.assert_allclose(np.asarray(out3), np.asarray(ref3), atol=0.0)

    # ---- bf16 case: rows must be copied bit-exactly (no f32 round-trip)
    h2b = h2.astype(jnp.bfloat16)
    out2b = jax.block_until_ready(unpool(h2b, P, idx))
    ref2b = jnp.zeros((P, F), jnp.bfloat16).at[idx].set(h2b)
    assert out2b.dtype == jnp.bfloat16
    np.testing.assert_array_equal(np.asarray(out2b, np.float32),
                                  np.asarray(ref2b, np.float32))

    # ---- non-multiple-of-8 node count (exercises padding + final slice)
    P_odd, N_odd = 13, 5
    idx_odd = jax.random.permutation(k4, P_odd)[:N_odd].astype(jnp.int32)
    h_odd = jax.random.normal(k2, (N_odd, F), dtype=jnp.float32)
    out_odd = jax.block_until_ready(unpool(h_odd, P_odd, idx_odd))
    ref_odd = jnp.zeros((P_odd, F), h_odd.dtype).at[idx_odd].set(h_odd)
    assert out_odd.shape == (P_odd, F)
    np.testing.assert_allclose(np.asarray(out_odd), np.asarray(ref_odd),
                               atol=0.0)

    print("KERNEL_OK")
</pallas_src>

<mosaic_0001>
module attributes {stable_mosaic.version = 11 : i64} {
  func.func @_gather_kernel(%arg0: i32, %arg1: i32, %arg2: memref<32x1xi32, #tpu.memory_space<vmem>>, %arg3: memref<24x96xi32, #tpu.memory_space<vmem>>, %arg4: memref<32x96xi32, #tpu.memory_space<vmem>>) attributes {dimension_semantics = [#tpu.dimension_semantics<parallel>, #tpu.dimension_semantics<parallel>], iteration_bounds = array<i64: 1, 2>, scalar_prefetch = 0 : i64, scratch_operands = 0 : i64, tpu.core_type = #tpu.core_type<tc>, window_params = [{transform_indices = @transform_0, window_bounds = array<i64: 32, 1>}, {pipeline_mode = #tpu.pipeline_mode<synchronous>, transform_indices = @transform_1, window_bounds = array<i64: 24, 96>}, {transform_indices = @transform_2, window_bounds = array<i64: 32, 96>}]} {
    %c0 = arith.constant 0 : index
    %c0_0 = arith.constant 0 : index
    %0 = vector.load %arg2[%c0, %c0_0] : memref<32x1xi32, #tpu.memory_space<vmem>>, vector<32x1xi32>
    %c0_i32 = arith.constant 0 : i32
    %1 = vector.broadcast %c0_i32 : i32 to vector<32x1xi32>
    %2 = arith.maxsi %0, %1 : vector<32x1xi32>
    %3 = vector.shape_cast %2 : vector<32x1xi32> to vector<32x1xi32>
    %4 = vector.broadcast %3 : vector<32x1xi32> to vector<32x96xi32>
    %c0_1 = arith.constant 0 : index
    %c0_2 = arith.constant 0 : index
    %5 = vector.load %arg3[%c0_1, %c0_2] : memref<24x96xi32, #tpu.memory_space<vmem>>, vector<24x96xi32>
    %6 = vector.shape_cast %4 : vector<32x96xi32> to vector<32x96x1xi32>
    %7 = vector.shape_cast %6 : vector<32x96x1xi32> to vector<32x96xi32>
    %8 = tpu.dynamic_gather %5[%7] in [0] : vector<24x96xi32>, vector<32x96xi32> -> vector<32x96xi32>
    %c0_i32_3 = arith.constant 0 : i32
    %9 = vector.broadcast %c0_i32_3 : i32 to vector<32x1xi32>
    %10 = arith.cmpi sge, %0, %9 : vector<32x1xi32>
    %c0_i32_4 = arith.constant 0 : i32
    %11 = vector.broadcast %c0_i32_4 : i32 to vector<32x96xi32>
    %12 = vector.shape_cast %10 : vector<32x1xi1> to vector<32x1xi1>
    %13 = vector.broadcast %12 : vector<32x1xi1> to vector<32x96xi1>
    %14 = arith.select %13, %8, %11 : vector<32x96xi1>, vector<32x96xi32>
    %c0_5 = arith.constant 0 : index
    %c0_6 = arith.constant 0 : index
    %15 = vector.load %arg4[%c0_5, %c0_6] : memref<32x96xi32, #tpu.memory_space<vmem>>, vector<32x96xi32>
    tpu.vector_store %arg4[%c0_5, %c0_6], %14 {strides = array<i32>} : memref<32x96xi32, #tpu.memory_space<vmem>>, vector<32x96xi32>,
    return
  }
  func.func @transform_0(%arg0: i32, %arg1: i32) -> (i32, i32) {
    %c0_i32 = arith.constant 0 : i32
    %c0_i32_0 = arith.constant 0 : i32
    return %arg1, %c0_i32 : i32, i32
  }
  func.func @transform_1(%arg0: i32, %arg1: i32) -> (i32, i32) {
    %c0_i32 = arith.constant 0 : i32
    %c0_i32_0 = arith.constant 0 : i32
    return %c0_i32, %arg0 : i32, i32
  }
  func.func @transform_2(%arg0: i32, %arg1: i32) -> (i32, i32) {
    %c0_i32 = arith.constant 0 : i32
    return %arg1, %arg0 : i32, i32
  }
}

module attributes {stable_mosaic.version = 11 : i64} {
  func.func @_gather_kernel(%arg0: i32, %arg1: i32, %arg2: memref<32x1xi32, #tpu.memory_space<vmem>>, %arg3: memref<24x96xi32, #tpu.memory_space<vmem>>, %arg4: memref<32x96xi32, #tpu.memory_space<vmem>>) attributes {dimension_semantics = [#tpu.dimension_semantics<parallel>, #tpu.dimension_semantics<parallel>], iteration_bounds = array<i64: 1, 2>, scalar_prefetch = 0 : i64, scratch_operands = 0 : i64, tpu.core_type = #tpu.core_type<tc>, window_params = [{transform_indices = @transform_0, window_bounds = array<i64: 32, 1>}, {transform_indices = @transform_1, window_bounds = array<i64: 24, 96>}, {transform_indices = @transform_2, window_bounds = array<i64: 32, 96>}]} {
    %c0 = arith.constant 0 : index
    %c0_0 = arith.constant 0 : index
    %0 = vector.load %arg2[%c0, %c0_0] : memref<32x1xi32, #tpu.memory_space<vmem>>, vector<32x1xi32>
    %c0_i32 = arith.constant 0 : i32
    %1 = vector.broadcast %c0_i32 : i32 to vector<32x1xi32>
    %2 = arith.maxsi %0, %1 : vector<32x1xi32>
    %3 = vector.shape_cast %2 : vector<32x1xi32> to vector<32x1xi32>
    %4 = vector.broadcast %3 : vector<32x1xi32> to vector<32x96xi32>
    %c0_1 = arith.constant 0 : index
    %c0_2 = arith.constant 0 : index
    %5 = vector.load %arg3[%c0_1, %c0_2] : memref<24x96xi32, #tpu.memory_space<vmem>>, vector<24x96xi32>
    %6 = vector.shape_cast %4 : vector<32x96xi32> to vector<32x96x1xi32>
    %7 = vector.shape_cast %6 : vector<32x96x1xi32> to vector<32x96xi32>
    %8 = tpu.dynamic_gather %5[%7] in [0] : vector<24x96xi32>, vector<32x96xi32> -> vector<32x96xi32>
    %c0_i32_3 = arith.constant 0 : i32
    %9 = vector.broadcast %c0_i32_3 : i32 to vector<32x1xi32>
    %10 = arith.cmpi sge, %0, %9 : vector<32x1xi32>
    %c0_i32_4 = arith.constant 0 : i32
    %11 = vector.broadcast %c0_i32_4 : i32 to vector<32x96xi32>
    %12 = vector.shape_cast %10 : vector<32x1xi1> to vector<32x1xi1>
    %13 = vector.broadcast %12 : vector<32x1xi1> to vector<32x96xi1>
    %14 = arith.select %13, %8, %11 : vector<32x96xi1>, vector<32x96xi32>
    %c0_5 = arith.constant 0 : index
    %c0_6 = arith.constant 0 : index
    %15 = vector.load %arg4[%c0_5, %c0_6] : memref<32x96xi32, #tpu.memory_space<vmem>>, vector<32x96xi32>
    tpu.vector_store %arg4[%c0_5, %c0_6], %14 {strides = array<i32>} : memref<32x96xi32, #tpu.memory_space<vmem>>, vector<32x96xi32>,
    return
  }
  func.func @transform_0(%arg0: i32, %arg1: i32) -> (i32, i32) {
    %c0_i32 = arith.constant 0 : i32
    %c0_i32_0 = arith.constant 0 : i32
    return %arg1, %c0_i32 : i32, i32
  }
  func.func @transform_1(%arg0: i32, %arg1: i32) -> (i32, i32) {
    %c0_i32 = arith.constant 0 : i32
    %c0_i32_0 = arith.constant 0 : i32
    return %c0_i32, %arg0 : i32, i32
  }
  func.func @transform_2(%arg0: i32, %arg1: i32) -> (i32, i32) {
    %c0_i32 = arith.constant 0 : i32
    return %arg1, %arg0 : i32, i32
  }
}

module attributes {stable_mosaic.version = 11 : i64} {
  func.func @kernel(%arg0: i32, %arg1: i32, %arg2: memref<16xi32, #tpu.memory_space<smem>>, %arg3: memref<8x32xi32, #tpu.memory_space<vmem>>, %arg4: memref<8x32xi32, #tpu.memory_space<vmem>>) attributes {dimension_semantics = [#tpu.dimension_semantics<parallel>, #tpu.dimension_semantics<parallel>], iteration_bounds = array<i64: 1, 2>, scalar_prefetch = 1 : i64, scratch_operands = 0 : i64, tpu.core_type = #tpu.core_type<tc>, window_params = [{transform_indices = @transform_0, window_bounds = array<i64: 8, 32>}, {transform_indices = @transform_1, window_bounds = array<i64: 8, 32>}]} {
    %c8_i32 = arith.constant 8 : i32
    %0 = arith.muli %arg1, %c8_i32 : i32
    %c0_i32 = arith.constant 0 : i32
    %1 = vector.broadcast %c0_i32 : i32 to vector<1x32xi32>
    %c0_i32_0 = arith.constant 0 : i32
    %2 = arith.addi %0, %c0_i32_0 : i32
    %3 = arith.index_cast %2 : i32 to index
    %4 = memref.load %arg2[%3] : memref<16xi32, #tpu.memory_space<smem>>
    %c0_i32_1 = arith.constant 0 : i32
    %5 = arith.maxsi %4, %c0_i32_1 : i32
    %6 = arith.index_cast %5 : i32 to index
    %c0 = arith.constant 0 : index
    %7 = vector.load %arg3[%6, %c0] : memref<8x32xi32, #tpu.memory_space<vmem>>, vector<1x32xi32>
    %c0_i32_2 = arith.constant 0 : i32
    %8 = arith.cmpi sge, %4, %c0_i32_2 : i32
    %9 = arith.select %8, %7, %1 : vector<1x32xi32>
    %10 = arith.index_cast %c0_i32_0 : i32 to index
    %c0_3 = arith.constant 0 : index
    %11 = vector.load %arg4[%10, %c0_3] : memref<8x32xi32, #tpu.memory_space<vmem>>, vector<1x32xi32>
    tpu.vector_store %arg4[%10, %c0_3], %9 {strides = array<i32>} : memref<8x32xi32, #tpu.memory_space<vmem>>, vector<1x32xi32>,
    %c1_i32 = arith.constant 1 : i32
    %12 = arith.addi %0, %c1_i32 : i32
    %13 = arith.index_cast %12 : i32 to index
    %14 = memref.load %arg2[%13] : memref<16xi32, #tpu.memory_space<smem>>
    %c0_i32_4 = arith.constant 0 : i32
    %15 = arith.maxsi %14, %c0_i32_4 : i32
    %16 = arith.index_cast %15 : i32 to index
    %c0_5 = arith.constant 0 : index
    %17 = vector.load %arg3[%16, %c0_5] : memref<8x32xi32, #tpu.memory_space<vmem>>, vector<1x32xi32>
    %c0_i32_6 = arith.constant 0 : i32
    %18 = arith.cmpi sge, %14, %c0_i32_6 : i32
    %19 = arith.select %18, %17, %1 : vector<1x32xi32>
    %20 = arith.index_cast %c1_i32 : i32 to index
    %c0_7 = arith.constant 0 : index
    %21 = vector.load %arg4[%20, %c0_7] : memref<8x32xi32, #tpu.memory_space<vmem>>, vector<1x32xi32>
    tpu.vector_store %arg4[%20, %c0_7], %19 {strides = array<i32>} : memref<8x32xi32, #tpu.memory_space<vmem>>, vector<1x32xi32>,
    %c2_i32 = arith.constant 2 : i32
    %22 = arith.addi %0, %c2_i32 : i32
    %23 = arith.index_cast %22 : i32 to index
    %24 = memref.load %arg2[%23] : memref<16xi32, #tpu.memory_space<smem>>
    %c0_i32_8 = arith.constant 0 : i32
    %25 = arith.maxsi %24, %c0_i32_8 : i32
    %26 = arith.index_cast %25 : i32 to index
    %c0_9 = arith.constant 0 : index
    %27 = vector.load %arg3[%26, %c0_9] : memref<8x32xi32, #tpu.memory_space<vmem>>, vector<1x32xi32>
    %c0_i32_10 = arith.constant 0 : i32
    %28 = arith.cmpi sge, %24, %c0_i32_10 : i32
    %29 = arith.select %28, %27, %1 : vector<1x32xi32>
    %30 = arith.index_cast %c2_i32 : i32 to index
    %c0_11 = arith.constant 0 : index
    %31 = vector.load %arg4[%30, %c0_11] : memref<8x32xi32, #tpu.memory_space<vmem>>, vector<1x32xi32>
    tpu.vector_store %arg4[%30, %c0_11], %29 {strides = array<i32>} : memref<8x32xi32, #tpu.memory_space<vmem>>, vector<1x32xi32>,
    %c3_i32 = arith.constant 3 : i32
    %32 = arith.addi %0, %c3_i32 : i32
    %33 = arith.index_cast %32 : i32 to index
    %34 = memref.load %arg2[%33] : memref<16xi32, #tpu.memory_space<smem>>
    %c0_i32_12 = arith.constant 0 : i32
    %35 = arith.maxsi %34, %c0_i32_12 : i32
    %36 = arith.index_cast %35 : i32 to index
    %c0_13 = arith.constant 0 : index
    %37 = vector.load %arg3[%36, %c0_13] : memref<8x32xi32, #tpu.memory_space<vmem>>, vector<1x32xi32>
    %c0_i32_14 = arith.constant 0 : i32
    %38 = arith.cmpi sge, %34, %c0_i32_14 : i32
    %39 = arith.select %38, %37, %1 : vector<1x32xi32>
    %40 = arith.index_cast %c3_i32 : i32 to index
    %c0_15 = arith.constant 0 : index
    %41 = vector.load %arg4[%40, %c0_15] : memref<8x32xi32, #tpu.memory_space<vmem>>, vector<1x32xi32>
    tpu.vector_store %arg4[%40, %c0_15], %39 {strides = array<i32>} : memref<8x32xi32, #tpu.memory_space<vmem>>, vector<1x32xi32>,
    %c4_i32 = arith.constant 4 : i32
    %42 = arith.addi %0, %c4_i32 : i32
    %43 = arith.index_cast %42 : i32 to index
    %44 = memref.load %arg2[%43] : memref<16xi32, #tpu.memory_space<smem>>
    %c0_i32_16 = arith.constant 0 : i32
    %45 = arith.maxsi %44, %c0_i32_16 : i32
    %46 = arith.index_cast %45 : i32 to index
    %c0_17 = arith.constant 0 : index
    %47 = vector.load %arg3[%46, %c0_17] : memref<8x32xi32, #tpu.memory_space<vmem>>, vector<1x32xi32>
    %c0_i32_18 = arith.constant 0 : i32
    %48 = arith.cmpi sge, %44, %c0_i32_18 : i32
    %49 = arith.select %48, %47, %1 : vector<1x32xi32>
    %50 = arith.index_cast %c4_i32 : i32 to index
    %c0_19 = arith.constant 0 : index
    %51 = vector.load %arg4[%50, %c0_19] : memref<8x32xi32, #tpu.memory_space<vmem>>, vector<1x32xi32>
    tpu.vector_store %arg4[%50, %c0_19], %49 {strides = array<i32>} : memref<8x32xi32, #tpu.memory_space<vmem>>, vector<1x32xi32>,
    %c5_i32 = arith.constant 5 : i32
    %52 = arith.addi %0, %c5_i32 : i32
    %53 = arith.index_cast %52 : i32 to index
    %54 = memref.load %arg2[%53] : memref<16xi32, #tpu.memory_space<smem>>
    %c0_i32_20 = arith.constant 0 : i32
    %55 = arith.maxsi %54, %c0_i32_20 : i32
    %56 = arith.index_cast %55 : i32 to index
    %c0_21 = arith.constant 0 : index
    %57 = vector.load %arg3[%56, %c0_21] : memref<8x32xi32, #tpu.memory_space<vmem>>, vector<1x32xi32>
    %c0_i32_22 = arith.constant 0 : i32
    %58 = arith.cmpi sge, %54, %c0_i32_22 : i32
    %59 = arith.select %58, %57, %1 : vector<1x32xi32>
    %60 = arith.index_cast %c5_i32 : i32 to index
    %c0_23 = arith.constant 0 : index
    %61 = vector.load %arg4[%60, %c0_23] : memref<8x32xi32, #tpu.memory_space<vmem>>, vector<1x32xi32>
    tpu.vector_store %arg4[%60, %c0_23], %59 {strides = array<i32>} : memref<8x32xi32, #tpu.memory_space<vmem>>, vector<1x32xi32>,
    %c6_i32 = arith.constant 6 : i32
    %62 = arith.addi %0, %c6_i32 : i32
    %63 = arith.index_cast %62 : i32 to index
    %64 = memref.load %arg2[%63] : memref<16xi32, #tpu.memory_space<smem>>
    %c0_i32_24 = arith.constant 0 : i32
    %65 = arith.maxsi %64, %c0_i32_24 : i32
    %66 = arith.index_cast %65 : i32 to index
    %c0_25 = arith.constant 0 : index
    %67 = vector.load %arg3[%66, %c0_25] : memref<8x32xi32, #tpu.memory_space<vmem>>, vector<1x32xi32>
    %c0_i32_26 = arith.constant 0 : i32
    %68 = arith.cmpi sge, %64, %c0_i32_26 : i32
    %69 = arith.select %68, %67, %1 : vector<1x32xi32>
    %70 = arith.index_cast %c6_i32 : i32 to index
    %c0_27 = arith.constant 0 : index
    %71 = vector.load %arg4[%70, %c0_27] : memref<8x32xi32, #tpu.memory_space<vmem>>, vector<1x32xi32>
    tpu.vector_store %arg4[%70, %c0_27], %69 {strides = array<i32>} : memref<8x32xi32, #tpu.memory_space<vmem>>, vector<1x32xi32>,
    %c7_i32 = arith.constant 7 : i32
    %72 = arith.addi %0, %c7_i32 : i32
    %73 = arith.index_cast %72 : i32 to index
    %74 = memref.load %arg2[%73] : memref<16xi32, #tpu.memory_space<smem>>
    %c0_i32_28 = arith.constant 0 : i32
    %75 = arith.maxsi %74, %c0_i32_28 : i32
    %76 = arith.index_cast %75 : i32 to index
    %c0_29 = arith.constant 0 : index
    %77 = vector.load %arg3[%76, %c0_29] : memref<8x32xi32, #tpu.memory_space<vmem>>, vector<1x32xi32>
    %c0_i32_30 = arith.constant 0 : i32
    %78 = arith.cmpi sge, %74, %c0_i32_30 : i32
    %79 = arith.select %78, %77, %1 : vector<1x32xi32>
    %80 = arith.index_cast %c7_i32 : i32 to index
    %c0_31 = arith.constant 0 : index
    %81 = vector.load %arg4[%80, %c0_31] : memref<8x32xi32, #tpu.memory_space<vmem>>, vector<1x32xi32>
    tpu.vector_store %arg4[%80, %c0_31], %79 {strides = array<i32>} : memref<8x32xi32, #tpu.memory_space<vmem>>, vector<1x32xi32>,
    %c8_i32_32 = arith.constant 8 : i32
    return
  }
  func.func @transform_0(%arg0: i32, %arg1: i32, %arg2: memref<16xi32, #tpu.memory_space<smem>>) -> (i32, i32) {
    %c0_i32 = arith.constant 0 : i32
    %c0_i32_0 = arith.constant 0 : i32
    return %c0_i32, %arg0 : i32, i32
  }
  func.func @transform_1(%arg0: i32, %arg1: i32, %arg2: memref<16xi32, #tpu.memory_space<smem>>) -> (i32, i32) {
    %c0_i32 = arith.constant 0 : i32
    return %arg1, %arg0 : i32, i32
  }
}

</mosaic_0001>

<bundles_post_ra>
// kernel: tpu_custom_call.1
= control target key start
LH: loop header
LB: loop body
LE: loop exit
PB: predicated region body
PF: predicated region fallthrough
CT: control target
= control target key end

     0   :  { %s521_s9 = smov [#allocation3]   ;;  %s715_s0 = inlined_call_operand.hbm [shape: s32[16], index: 0, kind: input, shape index: {}]   ;;  %s716_s1 = inlined_call_operand.hbm [shape: u32[8,32], index: 1, kind: input, shape index: {}]   ;;  %s717_s2 = inlined_call_operand.hbm [shape: u32[16,32], index: 2, kind: output, shape index: {}]  }
   0x1   :  { %8 = dma.hbm_to_smem %s715_s0, 16, %s521_s9, [#allocation2] }
   0x2   :  { %487 = dma.done.wait [#allocation2], 16 }
   0x3   :  { %488 = vsyncadd [#allocation2], 4294967280 }
   0x4   :  { %10 = sfence }
   0x5   :  { %11 = vsyncpa [#allocation5], 0 }
   0x6   :  { %12 = vsyncpa [#allocation6], 0 }
   0x7   :  { %14 = vsyncpa [#allocation6 + $0x1], 0  ;;  %s542_s12 = smov 0   ;;  %s544_s13 = smov 0  }
   0x8   :  { %s546_s14 = smov 0   ;;  %s548_s15 = smov 0  }
   0x9   :  { %s550_s16 = smov 0   ;;  %s552_s17 = smov 0  }
   0xa LB: > { %s324_s0 = sadd.s32 4294967295, %s519_s17   ;;  %s325_s18 = sadd.s32 4294967294, %s519_s17   ;;  %s519_s17 = sphi %s552_s17, %s20_s17   ;;  %s515_s16 = sphi %s550_s16, %s726_s16   ;;  %s511_s15 = sphi %s548_s15, %s725_s15   ;;  %s507_s14 = sphi %s546_s14, %s724_s14   ;;  %s503_s13 = sphi %s544_s13, %s723_s13   ;;  %s499_s12 = sphi %s542_s12, %s722_s12  }
   0xb   : > { %s29_s19 = sadd.s32 1, %s515_s16  ;;  %s67_s20 = sadd.s32 1, %s507_s14 }
   0xc   : > { %p30_p0 = scmp.ge.s32.totalorder %s29_s19, 2  ;;  %p77_p1 = scmp.ne.s32.totalorder %s507_s14, %s503_s13 }
   0xd   : > { %p78_p2 = scmp.eq.s32.totalorder %s324_s0, 1  ;;  %p83_p3 = scmp.ne.s32.totalorder %s503_s13, %s499_s12 }
   0xe   : > { %s728_s19 = smov (%p30_p0, %s29_s19), 0  ;;  %p84_p5 = scmp.eq.s32.totalorder %s325_s18, 1 }
   0xf   : > { %p582_p4 = por %p78_p2, %p77_p1  ;;  %s62_s22 = ssub.s32 %s515_s16, %s728_s19 }
  0x10   : > { %p326_p6 = scmp.ge.s32.totalorder %s519_s17, 1  ;;  %p65_p7 = scmp.eq.s32.totalorder %s62_s22, 0 }
  0x11   : > { %p589_p8 = por %p84_p5, %p83_p3  ;;  %p91_p9 = scmp.lt.s32.totalorder %s519_s17, 3 }
  0x12   : > { %s595_s24 = scalar_select %p65_p7, %s507_s14, %s67_s20  }
  0x13   : > { %p597_p10 = pnand %p326_p6, %p91_p9  ;;  %p601_p11 = scmp.eq.s32.totalorder %s324_s0, 0 }
  0x14   : > { %s522_s27 = smov [#allocation4]  }
  0x15   : > { %p342_p12 = pneg %p597_p10  ;;  %s106_s28 = sshll.u32 %s522_s27, 4  ;;  %s107_s28 = int_to_ptr.vmem [resolvable:$true] %s106_s28 }
  0x16   : > { %s422_s29 = scalar_lea.vmem %s107_s28, 128  ;;  %p430_p5 = scmp.lt.s32.totalorder %s107_s28, %s107_s28 }
  0x17   : > { %p343_p13 = pnand %p601_p11, %p342_p12  ;;  %p423_p1 = scmp.ne.s32.totalorder %s107_s28, %s422_s29 }
  0x18   : > { %p431_p6 = scmp.lt.s32.totalorder %s422_s29, %s422_s29 }
  0x19   : > { %p413_p0 = pneg %p343_p13 }
  0x1a   : > { %p432_p7 = por %p431_p6, %p430_p5 }
  0x1b   : > { %p425_p2 = pnand %p423_p1, %p413_p0 }
  0x1d   : > { %p426_p3 = pneg %p425_p2 }
  0x1f   : > { %p433_p9 = pnand %p432_p7, %p426_p3 }
  0x21   : > { %436 = shalt.err (!%p433_p9)
}
  0x22   : > { %345 = dma.hbm_to_vmem [thread:$0]  (!%p343_p13), %s716_s1, 128, %s107_s28, [#allocation5]  }
  0x23   : > { %119 = sbr.rel (%p597_p10) target bundleno = 98 (0x62), region = 24 }
  0x28   : > { %490 = dma.done.wait (%p601_p11), [#allocation5], 128  }
  0x29   : > { %492 = vsyncadd (%p601_p11), [#allocation5], 4294967168  ;;  %s131_s4 = sand.u32 1, %s503_s13   ;;  %s620_s5 = sshll.u32 %s511_s15, 3  ;;  %vm145_vm0 = vcmask 253952  }
  0x2a   : > { %s330_s6 = sshll.u32 %s131_s4, 3  ;;  %s135_s7 = sld [smem:[#allocation3 + %s620_s5]] }
  0x2b   : > { %s147_s8 = sadd.s32 1, %s620_s5  ;;  %s159_s9 = sadd.s32 2, %s620_s5 }
  0x2c   : > { %s148_s10 = sld [smem:[#allocation3 + %s147_s8]]  ;;  %s171_s11 = sadd.s32 3, %s620_s5 }
  0x2d   : > { %s160_s0 = sld [smem:[#allocation3 + %s159_s9]]  ;;  %s183_s18 = sadd.s32 4, %s620_s5 }
  0x2e   : > { %s629_s20 = sld [smem:[#allocation3 + %s171_s11]]  ;;  %s195_s22 = sadd.s32 5, %s620_s5 }
  0x2f   : > { %s632_s25 = sld [smem:[#allocation3 + %s183_s18]]  ;;  %s207_s26 = sadd.s32 6, %s620_s5 }
  0x30   : > { %p136_p10 = scmp.gt.s32.totalorder %s135_s7, 0  ;;  %p140_p11 = scmp.ge.s32.totalorder %s135_s7, 0 }
  0x31   : > { %s635_s30 = scalar_lea.vmem [#allocation7], %s330_s6  ;;  %s196_s11 = sld [smem:[#allocation3 + %s195_s22]] }
  0x32   : > { %s730_s7 = smov (!%p136_p10, %s135_s7), 0  ;;  %p149_p12 = scmp.gt.s32.totalorder %s148_s10, 0 }
  0x33   : > { %s141_s27 = scalar_select %p140_p11, 1, 0 }
  0x34   : > { %s138_s28 = scalar_lea.vmem [#allocation4], %s730_s7  ;;  %p153_p13 = scmp.ge.s32.totalorder %s148_s10, 0 }
  0x35   : > { %v139_v0 = vld [vmem:[%s138_s28] sm:$0x1]  ;;  %v142_v1 = vstv %s141_s27  ;;  %p161_p0 = scmp.gt.s32.totalorder %s160_s0, 0  ;;  %s732_s10 = smov (!%p149_p12, %s148_s10), 0 }
  0x36   : > { %vm143_vm1 = vcmp.eq.s32.totalorder %v142_v1, 1  ;;  %s154_s29 = scalar_select %p153_p13, 1, 0 }
  0x37   : > { %v144_v2 = vsel %vm143_vm1, %v139_v0, 0  ;;  %p165_p1 = scmp.ge.s32.totalorder %s160_s0, 0  ;;  %s151_s3 = scalar_lea.vmem [#allocation4], %s732_s10 }
  0x38   : > { %146 = vst.msk [vmem:[%s635_s30] sm:$0x1] %vm145_vm0, %v144_v2  ;;  %v152_v3 = vld [vmem:[%s151_s3] sm:$0x1]  ;;  %v155_v4 = vstv %s154_s29  ;;  %s734_s0 = smov (!%p161_p0, %s160_s0), 0  ;;  %p173_p2 = scmp.gt.s32.totalorder %s629_s20, 0 }
  0x39   : > { %vm156_vm2 = vcmp.eq.s32.totalorder %v155_v4, 1  ;;  %s166_s7 = scalar_select %p165_p1, 1, 0 }
  0x3a   : > { %v157_v5 = vsel %vm156_vm2, %v152_v3, 0  ;;  %s163_s6 = scalar_lea.vmem [#allocation4], %s734_s0  ;;  %p177_p3 = scmp.ge.s32.totalorder %s629_s20, 0 }
  0x3b   : > { %158 = vst.msk [vmem:[%s635_s30 + $0x1] sm:$0x1] %vm145_vm0, %v157_v5  ;;  %v164_v6 = vld [vmem:[%s163_s6] sm:$0x1]  ;;  %v167_v7 = vstv %s166_s7  ;;  %p185_p5 = scmp.gt.s32.totalorder %s632_s25, 0  ;;  %s736_s20 = smov (!%p173_p2, %s629_s20), 0 }
  0x3c   : > { %vm168_vm3 = vcmp.eq.s32.totalorder %v167_v7, 1  ;;  %s178_s8 = scalar_select %p177_p3, 1, 0 }
  0x3d   : > { %v169_v8 = vsel %vm168_vm3, %v164_v6, 0  ;;  %p189_p6 = scmp.ge.s32.totalorder %s632_s25, 0  ;;  %s175_s9 = scalar_lea.vmem [#allocation4], %s736_s20 }
  0x3e   : > { %170 = vst.msk [vmem:[%s635_s30 + $0x2] sm:$0x1] %vm145_vm0, %v169_v8  ;;  %v176_v9 = vld [vmem:[%s175_s9] sm:$0x1]  ;;  %v179_v10 = vstv %s178_s8  ;;  %s738_s25 = smov (!%p185_p5, %s632_s25), 0  ;;  %s208_s18 = sld [smem:[#allocation3 + %s207_s26]] }
  0x3f   : > { %vm180_vm4 = vcmp.eq.s32.totalorder %v179_v10, 1  ;;  %s190_s10 = scalar_select %p189_p6, 1, 0 }
  0x40   : > { %v181_v11 = vsel %vm180_vm4, %v176_v9, 0  ;;  %s187_s0 = scalar_lea.vmem [#allocation4], %s738_s25  ;;  %s219_s27 = sadd.s32 7, %s620_s5 }
  0x41   : > { %182 = vst.msk [vmem:[%s635_s30 + $0x3] sm:$0x1] %vm145_vm0, %v181_v11  ;;  %v188_v12 = vld [vmem:[%s187_s0] sm:$0x1]  ;;  %v191_v13 = vstv %s190_s10  ;;  %s220_s20 = sld [smem:[#allocation3 + %s219_s27]]  ;;  %s333_s28 = sshll.u32 %s511_s15, 7 }
  0x42   : > { %vm192_vm5 = vcmp.eq.s32.totalorder %v191_v13, 1  ;;  %s246_s29 = sshll.u32 %s635_s30, 4  ;;  %p197_p7 = scmp.gt.s32.totalorder %s196_s11, 0  ;;  %s247_s29 = int_to_ptr.vmem [resolvable:$true] %s246_s29 }
  0x43   : > { %v193_v14 = vsel %vm192_vm5, %v188_v12, 0  ;;  %p201_p9 = scmp.ge.s32.totalorder %s196_s11, 0  ;;  %s669_s9 = scalar_lea.hbm %s717_s2, %s333_s28 }
  0x44   : > { %194 = vst.msk [vmem:[%s635_s30 + $0x4] sm:$0x1] %vm145_vm0, %v193_v14  ;;  %p209_p10 = scmp.gt.s32.totalorder %s208_s18, 0  ;;  %p213_p11 = scmp.ge.s32.totalorder %s208_s18, 0 }
  0x45   : > { %s740_s11 = smov (!%p197_p7, %s196_s11), 0  ;;  %s232_s10 = scalar_lea.sflag [#allocation6], %s131_s4 }
  0x46   : > { %s202_s22 = scalar_select %p201_p9, 1, 0 }
  0x47   : > { %p221_p12 = scmp.gt.s32.totalorder %s220_s20, 0  ;;  %s199_s25 = scalar_lea.vmem [#allocation4], %s740_s11 }
  0x48   : > { %v200_v15 = vld [vmem:[%s199_s25] sm:$0x1]  ;;  %v203_v16 = vstv %s202_s22  ;;  %s742_s18 = smov (!%p209_p10, %s208_s18), 0  ;;  %p225_p13 = scmp.ge.s32.totalorder %s220_s20, 0 }
  0x49   : > { %vm204_vm6 = vcmp.eq.s32.totalorder %v203_v16, 1  ;;  %s214_s5 = scalar_select %p213_p11, 1, 0 }
  0x4a   : > { %v205_v17 = vsel %vm204_vm6, %v200_v15, 0  ;;  %s211_s26 = scalar_lea.vmem [#allocation4], %s742_s18  ;;  %s744_s20 = smov (!%p221_p12, %s220_s20), 0 }
  0x4b   : > { %206 = vst.msk [vmem:[%s635_s30 + $0x5] sm:$0x1] %vm145_vm0, %v205_v17  ;;  %v212_v18 = vld [vmem:[%s211_s26] sm:$0x1]  ;;  %v215_v19 = vstv %s214_s5  ;;  %s226_s3 = scalar_select %p225_p13, 1, 0 }
  0x4c   : > { %vm216_vm7 = vcmp.eq.s32.totalorder %v215_v19, 1  ;;  %s223_s7 = scalar_lea.vmem [#allocation4], %s744_s20  ;;  %s437_s11 = scalar_lea.vmem %s247_s29, 128 }
  0x4d   : > { %v217_v20 = vsel %vm216_vm7, %v212_v18, 0  ;;  %v224_v21 = vld [vmem:[%s223_s7] sm:$0x1]  ;;  %v227_v22 = vstv %s226_s3  ;;  %p438_p0 = scmp.ne.s32.totalorder %s247_s29, %s437_s11  ;;  %s523_s0 = smov [#allocation7]  }
  0x4e   : > { %218 = vst.msk [vmem:[%s635_s30 + $0x6] sm:$0x1] %vm145_vm0, %v217_v20  ;;  %vm228_vm8 = vcmp.eq.s32.totalorder %v227_v22, 1  ;;  %s441_s18 = sshll.u32 %s523_s0, 4  ;;  %s442_s18 = int_to_ptr.vmem [resolvable:$false] %s441_s18 }
  0x4f   : > { %v229_v23 = vsel %vm228_vm8, %v224_v21, 0  ;;  %p439_p1 = pnand %p438_p0, %p582_p4  ;;  %s443_s15 = scalar_lea.vmem %s442_s18, 256 }
  0x50   : > { %230 = vst.msk [vmem:[%s635_s30 + $0x7] sm:$0x1] %vm145_vm0, %v229_v23  ;;  %p444_p3 = scmp.lt.s32.totalorder %s247_s29, %s442_s18  ;;  %p445_p5 = scmp.lt.s32.totalorder %s443_s15, %s437_s11 }
  0x51   : > { %p440_p2 = pneg %p439_p1 }
  0x52   : > { %p446_p6 = por %p445_p5, %p444_p3 }
  0x54   : > { %p447_p7 = pnand %p446_p6, %p440_p2 }
  0x56   : > { %450 = shalt.err (!%p447_p7)
}
  0x57   : > { %s451_s30 = scalar_lea.hbm %s669_s9, 128  ;;  %s455_s20 = scalar_lea.hbm %s717_s2, 256 }
  0x58   : > { %p452_p9 = scmp.ne.s32.totalorder %s669_s9, %s451_s30  ;;  %p456_p12 = scmp.lt.s32.totalorder %s669_s9, %s717_s2 }
  0x59   : > { %p457_p13 = scmp.lt.s32.totalorder %s455_s20, %s451_s30 }
  0x5a   : > { %p453_p10 = pnand %p452_p9, %p582_p4 }
  0x5b   : > { %p458_p0 = por %p457_p13, %p456_p12 }
  0x5c   : > { %p454_p11 = pneg %p453_p10 }
  0x5e   : > { %p459_p1 = pnand %p458_p0, %p454_p11 }
  0x60   : > { %462 = shalt.err (!%p459_p1)
}
  0x61   : > { %340 = dma.vmem_to_hbm [thread:$0]  (%p582_p4), %s247_s29, 128, %s669_s9, %s232_s10  }
  0x62 PF: > { %p352_p2 = scmp.ge.s32.totalorder %s519_s17, 2  ;;  %s258_s25 = sand.u32 1, %s499_s12  }
  0x63   : > { %s259_s5 = scalar_lea.sflag [#allocation6], %s258_s25 }
  0x64   : > { %p347_p3 = pnand %p352_p2, %p589_p8 }
  0x66   : > { %p348_p5 = pneg %p347_p3 }
  0x68   : > { %494 = dma.done.wait (%p348_p5), %s259_s5, 128  }
  0x69   : > { %496 = vsyncadd (%p348_p5), %s259_s5, 4294967168  ;;  %s20_s17 = sadd.s32 1, %s519_s17   ;;  %s722_s12 = smov %s503_s13 }
  0x6a   : > { %p17_p6 = scmp.ge.s32.totalorder %s20_s17, 4   ;;  %s723_s13 = smov %s507_s14 }
  0x6b   : > { %s724_s14 = smov %s595_s24  ;;  %s725_s15 = smov %s515_s16 }
  0x6c   : > { %s726_s16 = smov %s728_s19  ;;  %19 = sbr.rel (!%p17_p6) target bundleno = 10 (0xa), region = 70 }
  0x71   :  { %264 = vsyncpa [#allocation5], 1 }
  0x72   :  { %266 = vsyncpa [#allocation5 + $0x1], 1 }
  0x73   :  { %267 = vsyncpa [#allocation6], 1 }
  0x74   :  { %269 = vsyncpa [#allocation6 + $0x1], 1 }

</bundles_post_ra>
